<compile_context>
chip_gen: v6e
topology: v6e:2x2x1
jax: 0.10.0
libtpu: 0.0.40
codegen_flags: <defaults>
</compile_context>

<pallas_src>
import functools

import jax
import jax.numpy as jnp
from jax.experimental import pallas as pl
from jax.experimental.pallas import tpu as pltpu


_VMEM_LIMIT = 32 * 1024 * 1024  # safe on v5e/v6e (128 MiB) and v7x (64 MiB per TC)


def _round_up(x, m):
    return ((x + m - 1) // m) * m


# ----------------------------------------------------------------------------
# Tiled linear (x @ W [+ b]) — weights resident in VMEM, row-tiled over tokens.
# ----------------------------------------------------------------------------
def _matmul_kernel(x_ref, w_ref, o_ref):
    acc = jnp.dot(x_ref[...], w_ref[...], preferred_element_type=jnp.float32)
    o_ref[...] = acc.astype(o_ref.dtype)


def _matmul_bias_kernel(x_ref, w_ref, b_ref, o_ref):
    acc = jnp.dot(x_ref[...], w_ref[...], preferred_element_type=jnp.float32)
    o_ref[...] = (acc + b_ref[...]).astype(o_ref.dtype)


def _pick_row_tile(M, K, N, in_bytes, out_bytes, budget=20 * 1024 * 1024, tm_max=256):
    """Largest row tile (<= tm_max, multiple of 8) whose double-buffered footprint fits the budget."""
    # Per-step VMEM: 2*(x block) + 2*(out block) + 2*(resident weights + bias).
    # NOTE: for very large K*N the weight-resident design should be replaced by a K/N grid axis
    # with a VMEM f32 accumulator; not needed at these sizes.
    tm = min(tm_max, _round_up(M, 8))
    while tm > 8:
        footprint = 2 * tm * (K * in_bytes + N * out_bytes) + 2 * in_bytes * (K * N + N)
        if footprint <= budget:
            break
        tm = max(8, _round_up(tm // 2, 8))
    return tm


def _linear(x2d, w, b=None, *, out_dtype, tm_max=256):
    """x2d: (M, K) bf16/f32; w: (K, N); b: (N,) or None. Returns (M, N) in out_dtype."""
    M, K = x2d.shape
    Kw, N = w.shape
    assert Kw == K
    in_bytes = x2d.dtype.itemsize
    out_bytes = jnp.dtype(out_dtype).itemsize

    tm = _pick_row_tile(M, K, N, in_bytes, out_bytes, tm_max=tm_max)
    M_pad = _round_up(M, tm)
    x_p = jnp.pad(x2d, ((0, M_pad - M), (0, 0))) if M_pad != M else x2d
    grid = (M_pad // tm,)

    in_specs = [
        pl.BlockSpec((tm, K), lambda i: (i, 0)),      # x row tile
        pl.BlockSpec((K, N), lambda i: (0, 0)),       # resident weight (constant index map)
    ]
    args = [x_p, w]
    if b is not None:
        in_specs.append(pl.BlockSpec((1, N), lambda i: (0, 0)))
        args.append(b.reshape(1, N))
        kernel = _matmul_bias_kernel
    else:
        kernel = _matmul_kernel

    bytes_accessed = int(
        x_p.size * in_bytes + w.size * w.dtype.itemsize
        + (b.size * b.dtype.itemsize if b is not None else 0)
        + M_pad * N * out_bytes
    )

    out = pl.pallas_call(
        kernel,
        out_shape=jax.ShapeDtypeStruct((M_pad, N), out_dtype),
        grid_spec=pltpu.PrefetchScalarGridSpec(
            num_scalar_prefetch=0,
            grid=grid,
            in_specs=in_specs,
            out_specs=pl.BlockSpec((tm, N), lambda i: (i, 0)),
        ),
        compiler_params=pltpu.CompilerParams(
            dimension_semantics=("parallel",),   # row tiles shard across TCs on v7x
            vmem_limit_bytes=_VMEM_LIMIT,
        ),
        cost_estimate=pl.CostEstimate(
            flops=int(2 * M_pad * K * N),
            transcendentals=0,
            bytes_accessed=bytes_accessed,
        ),
    )(*args)

    return out[:M] if M_pad != M else out


# ----------------------------------------------------------------------------
# Attention core: softmax(q @ k^T * scale) @ v, per (batch*head).
#   - fast path: the full KV sequence fits in one tile (no scratch, one-shot softmax)
#   - flash path: online softmax over kv tiles (reduction axis last, "arbitrary")
# ----------------------------------------------------------------------------
def _attn_single_block_kernel(q_ref, k_ref, v_ref, o_ref, *, scale, kv_len, needs_mask):
    q = q_ref[...]                                   # (tq, d) bf16
    k = k_ref[...]                                   # (Sk, d) bf16
    s = jax.lax.dot_general(q, k, (((1,), (1,)), ((), ())),
                            preferred_element_type=jnp.float32) * scale   # (tq, Sk) f32

    if needs_mask:  # static: only traced when the kv sequence was padded
        kv_pos = jax.lax.broadcasted_iota(jnp.int32, s.shape, 1)
        s = jnp.where(kv_pos < kv_len, s, -1e30)

    m = s.max(axis=-1, keepdims=True)
    p = jnp.exp(s - m)
    l = p.sum(axis=-1, keepdims=True)
    o = jnp.dot(p.astype(v_ref.dtype), v_ref[...], preferred_element_type=jnp.float32)
    o_ref[...] = (o * pl.reciprocal(l, approx=True)).astype(o_ref.dtype)


def _flash_attn_kernel(q_ref, k_ref, v_ref, o_ref, m_sc, l_sc, acc_sc,
                       *, scale, kv_len, tk, needs_mask):
    ki = pl.program_id(2)

    @pl.when(ki == 0)
    def _init():
        m_sc[...] = jnp.full_like(m_sc, -jnp.inf)
        l_sc[...] = jnp.zeros_like(l_sc)
        acc_sc[...] = jnp.zeros_like(acc_sc)

    q = q_ref[...]                                   # (tq, d) bf16
    k = k_ref[...]                                   # (tk, d) bf16
    s = jax.lax.dot_general(q, k, (((1,), (1,)), ((), ())),
                            preferred_element_type=jnp.float32) * scale   # (tq, tk) f32

    if needs_mask:  # static: only traced when the kv sequence was padded
        kv_pos = ki * tk + jax.lax.broadcasted_iota(jnp.int32, s.shape, 1)
        s = jnp.where(kv_pos < kv_len, s, -1e30)

    m_prev = m_sc[...]
    m_new = jnp.maximum(m_prev, s.max(axis=-1, keepdims=True))
    alpha = jnp.exp(m_prev - m_new)
    p = jnp.exp(s - m_new)
    l_sc[...] = alpha * l_sc[...] + p.sum(axis=-1, keepdims=True)
    acc_sc[...] = alpha * acc_sc[...] + jnp.dot(
        p.astype(v_ref.dtype), v_ref[...], preferred_element_type=jnp.float32)
    m_sc[...] = m_new

    @pl.when(ki == pl.num_programs(2) - 1)
    def _finalize():
        o_ref[...] = (acc_sc[...] * pl.reciprocal(l_sc[...], approx=True)
                      ).astype(o_ref.dtype)


def _attention_core(q, k, v, *, scale, kv_len, tq, tk, out_dtype):
    """q, k, v: (batch*heads, seq_pad, dim_head) bf16. Returns (batch*heads, seq_pad, dim_head)."""
    BH, Sq, D = q.shape
    Sk = k.shape[1]
    n_q, n_kv = Sq // tq, Sk // tk
    needs_mask = (Sk != kv_len)

    bytes_accessed = int((q.size + k.size + v.size) * q.dtype.itemsize
                         + BH * Sq * D * jnp.dtype(out_dtype).itemsize)
    cost = pl.CostEstimate(
        flops=int(4 * BH * Sq * Sk * D),
        transcendentals=int(BH * Sq * Sk),
        bytes_accessed=bytes_accessed,
    )

    if n_kv == 1:
        # Entire KV sequence resident per grid point: one-shot softmax, no scratch, no
        # init/finalize phases, no rescaling — strictly less VPU work than the flash path.
        kernel = functools.partial(
            _attn_single_block_kernel, scale=scale, kv_len=kv_len, needs_mask=needs_mask)
        return pl.pallas_call(
            kernel,
            out_shape=jax.ShapeDtypeStruct((BH, Sq, D), out_dtype),
            grid_spec=pltpu.PrefetchScalarGridSpec(
                num_scalar_prefetch=0,
                grid=(BH, n_q),
                in_specs=[
                    pl.BlockSpec((None, tq, D), lambda b, qi: (b, qi, 0)),  # q
                    pl.BlockSpec((None, Sk, D), lambda b, qi: (b, 0, 0)),   # k (full)
                    pl.BlockSpec((None, Sk, D), lambda b, qi: (b, 0, 0)),   # v (full)
                ],
                out_specs=pl.BlockSpec((None, tq, D), lambda b, qi: (b, qi, 0)),
            ),
            compiler_params=pltpu.CompilerParams(
                dimension_semantics=("parallel", "parallel"),
                vmem_limit_bytes=_VMEM_LIMIT,
            ),
            cost_estimate=cost,
        )(q, k, v)

    kernel = functools.partial(
        _flash_attn_kernel, scale=scale, kv_len=kv_len, tk=tk, needs_mask=needs_mask)

    return pl.pallas_call(
        kernel,
        out_shape=jax.ShapeDtypeStruct((BH, Sq, D), out_dtype),
        grid_spec=pltpu.PrefetchScalarGridSpec(
            num_scalar_prefetch=0,
            grid=(BH, n_q, n_kv),
            in_specs=[
                pl.BlockSpec((None, tq, D), lambda b, qi, ki: (b, qi, 0)),  # q
                pl.BlockSpec((None, tk, D), lambda b, qi, ki: (b, ki, 0)),  # k
                pl.BlockSpec((None, tk, D), lambda b, qi, ki: (b, ki, 0)),  # v
            ],
            out_specs=pl.BlockSpec((None, tq, D), lambda b, qi, ki: (b, qi, 0)),
            scratch_shapes=[
                pltpu.VMEM((tq, 1), jnp.float32),   # running max
                pltpu.VMEM((tq, 1), jnp.float32),   # running denom
                pltpu.VMEM((tq, D), jnp.float32),   # f32 accumulator
            ],
        ),
        compiler_params=pltpu.CompilerParams(
            dimension_semantics=("parallel", "parallel", "arbitrary"),
            vmem_limit_bytes=_VMEM_LIMIT,
        ),
        cost_estimate=cost,
    )(q, k, v)


# ----------------------------------------------------------------------------
# Full module forward.
# ----------------------------------------------------------------------------
def attention_forward(x, w_qkv, w_out, b_out, *, heads, dim_head):
    """x: (batch, seq, dim). w_qkv: (dim, 3*inner)  [= to_qkv.weight.T, bias-free],
    w_out: (inner, dim) [= to_out[0].weight.T], b_out: (dim,). Dropout(p=0) is identity."""
    batch, seq, dim = x.shape
    inner = heads * dim_head
    assert w_qkv.shape == (dim, 3 * inner) and w_out.shape == (inner, dim)
    scale = float(dim) ** -0.5          # NOTE: module scales by dim**-0.5, not dim_head**-0.5
    cdt = jnp.bfloat16                  # MXU compute dtype; accumulation stays f32 in-kernel

    M = batch * seq
    x2d = x.reshape(M, dim).astype(cdt)

    # 1) fused QKV projection (no bias).
    qkv = _linear(x2d, w_qkv.astype(cdt), None, out_dtype=cdt)          # (M, 3*inner)

    # 2) split heads: chunk(3) then 'n l (h d) -> n h l d'.
    qkv = qkv.reshape(batch, seq, 3, heads, dim_head)
    qkv = jnp.transpose(qkv, (2, 0, 3, 1, 4))                           # (3, b, h, s, d)
    q, k, v = (qkv[i].reshape(batch * heads, seq, dim_head) for i in range(3))

    # seq tiling (pad to the tile; padded kv positions are masked inside the kernel).
    t = min(256, _round_up(seq, 8))
    seq_pad = _round_up(seq, t)
    if seq_pad != seq:
        pad = ((0, 0), (0, seq_pad - seq), (0, 0))
        q, k, v = (jnp.pad(a, pad) for a in (q, k, v))

    # 3) attention core (single-block softmax for short sequences, online softmax otherwise).
    o = _attention_core(q, k, v, scale=scale, kv_len=seq, tq=t, tk=t, out_dtype=cdt)
    o = o[:, :seq, :]

    # 4) merge heads 'n h l d -> n l (h d)' and output projection (+bias); dropout p=0 omitted.
    o = o.reshape(batch, heads, seq, dim_head)
    o = jnp.transpose(o, (0, 2, 1, 3)).reshape(M, inner)
    y = _linear(o, w_out.astype(cdt), b_out.astype(jnp.float32), out_dtype=x.dtype)
    return y.reshape(batch, seq, dim)


if __name__ == "__main__":
    # Small but lane-aligned demo shapes (dim, dim_head multiples of 128 for lane-dense stores).
    batch, seq, dim = 2, 16, 128
    heads, dim_head = 2, 128
    inner = heads * dim_head

    key = jax.random.PRNGKey(0)
    kx, kq, ko, kb = jax.random.split(key, 4)

    x = jax.random.normal(kx, (batch, seq, dim), dtype=jnp.float32)

    # PyTorch Linear-style fan-in init; weights stored pre-transposed as (in, out).
    lim_qkv = 1.0 / float(jnp.sqrt(dim))
    lim_out = 1.0 / float(jnp.sqrt(inner))
    w_qkv = jax.random.uniform(kq, (dim, 3 * inner), minval=-lim_qkv, maxval=lim_qkv,
                               dtype=jnp.float32)
    w_out = jax.random.uniform(ko, (inner, dim), minval=-lim_out, maxval=lim_out,
                               dtype=jnp.float32)
    b_out = jax.random.uniform(kb, (dim,), minval=-lim_out, maxval=lim_out, dtype=jnp.float32)

    out = attention_forward(x, w_qkv, w_out, b_out, heads=heads, dim_head=dim_head)
    out = jax.block_until_ready(out)

    # Pure-JAX f32 reference of the PyTorch module (Dropout p=0 is identity).
    scale = dim ** (-0.5)
    qkv_ref = x @ w_qkv
    q_r, k_r, v_r = jnp.split(qkv_ref, 3, axis=-1)

    def split_heads(t):
        return t.reshape(batch, seq, heads, dim_head).transpose(0, 2, 1, 3)

    q_r, k_r, v_r = map(split_heads, (q_r, k_r, v_r))
    dots = jnp.einsum('nhid,nhjd->nhij', q_r, k_r) * scale
    attn = jax.nn.softmax(dots, axis=-1)
    o_r = jnp.einsum('nhij,nhjd->nhid', attn, v_r)
    o_r = o_r.transpose(0, 2, 1, 3).reshape(batch, seq, inner)
    ref = o_r @ w_out + b_out

    assert out.shape == x.shape
    max_err = float(jnp.max(jnp.abs(out - ref)))
    assert jnp.allclose(out, ref, atol=5e-2, rtol=5e-2), f"mismatch vs reference, max abs err={max_err}"

    print("KERNEL_OK")
</pallas_src>

<mosaic_0001>
module attributes {stable_mosaic.version = 11 : i64} {
  func.func @_matmul_kernel(%arg0: i32, %arg1: memref<32x128xbf16, #tpu.memory_space<vmem>>, %arg2: memref<128x768xbf16, #tpu.memory_space<vmem>>, %arg3: memref<32x768xbf16, #tpu.memory_space<vmem>>) attributes {dimension_semantics = [#tpu.dimension_semantics<parallel>], iteration_bounds = array<i64: 1>, scalar_prefetch = 0 : i64, scratch_operands = 0 : i64, tpu.core_type = #tpu.core_type<tc>, window_params = [{transform_indices = @transform_0, window_bounds = array<i64: 32, 128>}, {pipeline_mode = #tpu.pipeline_mode<synchronous>, transform_indices = @transform_1, window_bounds = array<i64: 128, 768>}, {transform_indices = @transform_2, window_bounds = array<i64: 32, 768>}]} {
    %c0 = arith.constant 0 : index
    %c0_0 = arith.constant 0 : index
    %0 = vector.load %arg1[%c0, %c0_0] : memref<32x128xbf16, #tpu.memory_space<vmem>>, vector<32x128xbf16>
    %c0_1 = arith.constant 0 : index
    %c0_2 = arith.constant 0 : index
    %1 = vector.load %arg2[%c0_1, %c0_2] : memref<128x768xbf16, #tpu.memory_space<vmem>>, vector<128x768xbf16>
    %cst = arith.constant dense<0.000000e+00> : vector<32x768xf32>
    %2 = tpu.matmul %0, %1, %cst {dimension_numbers = #tpu.dot_dimension_numbers<[1], [0], [0], [1], [0, 0, 1, 1], [], []>} : vector<32x128xbf16>, vector<128x768xbf16>, vector<32x768xf32> -> vector<32x768xf32>
    %3 = arith.truncf %2 : vector<32x768xf32> to vector<32x768xbf16>
    %c0_3 = arith.constant 0 : index
    %c0_4 = arith.constant 0 : index
    %4 = vector.load %arg3[%c0_3, %c0_4] : memref<32x768xbf16, #tpu.memory_space<vmem>>, vector<32x768xbf16>
    tpu.vector_store %arg3[%c0_3, %c0_4], %3 {strides = array<i32>} : memref<32x768xbf16, #tpu.memory_space<vmem>>, vector<32x768xbf16>,
    return
  }
  func.func @transform_0(%arg0: i32) -> (i32, i32) {
    %c0_i32 = arith.constant 0 : i32
    %c0_i32_0 = arith.constant 0 : i32
    return %arg0, %c0_i32 : i32, i32
  }
  func.func @transform_1(%arg0: i32) -> (i32, i32) {
    %c0_i32 = arith.constant 0 : i32
    %c0_i32_0 = arith.constant 0 : i32
    %c0_i32_1 = arith.constant 0 : i32
    return %c0_i32, %c0_i32_0 : i32, i32
  }
  func.func @transform_2(%arg0: i32) -> (i32, i32) {
    %c0_i32 = arith.constant 0 : i32
    %c0_i32_0 = arith.constant 0 : i32
    return %arg0, %c0_i32 : i32, i32
  }
}

</mosaic_0001>

<bundles_post_ra>
// kernel: tpu_custom_call.1
= control target key start
LH: loop header
LB: loop body
LE: loop exit
PB: predicated region body
PF: predicated region fallthrough
CT: control target
= control target key end

     0   :  { %7 = vsyncpa [#allocation3], 0  ;;  %s888_s0 = inlined_call_operand.hbm [shape: bf16[32,128], index: 0, kind: input, shape index: {}]   ;;  %s889_s1 = inlined_call_operand.hbm [shape: bf16[128,768], index: 1, kind: input, shape index: {}]   ;;  %s890_s2 = inlined_call_operand.hbm [shape: bf16[32,768], index: 2, kind: output, shape index: {}]  }
   0x1   :  { %8 = vsyncpa [#allocation6], 0 }
   0x2   :  { %9 = vsyncpa [#allocation4], 0  ;;  %s844_s9 = smov [#allocation2]  }
   0x3   :  { %s15_s10 = sshll.u32 %s844_s9, 4  ;;  %s16_s10 = int_to_ptr.vmem [resolvable:$true] %s15_s10 }
   0x4   :  { %s786_s11 = scalar_lea.vmem %s16_s10, 256  ;;  %p791_p1 = scmp.lt.s32.totalorder %s16_s10, %s16_s10 }
   0x5   :  { %p787_p0 = scmp.ne.s32.totalorder %s16_s10, %s786_s11  ;;  %p792_p2 = scmp.lt.s32.totalorder %s786_s11, %s786_s11 }
   0x7   :  { %p793_p3 = por %p792_p2, %p791_p1 }
   0x9   :  { %p794_p4 = pnand %p793_p3, %p787_p0 }
   0xb   :  { %797 = shalt.err (!%p794_p4)
}
   0xc   :  { %s845_s12 = smov 64   ;;  %s846_s13 = smov 4  }
   0xd   :  { %21 = dma.hbm_to_vmem [thread:$0]  %s888_s0, 256, %s16_s10, [#allocation3], %s845_s12, %s845_s12, %s846_s13  }
   0xe   :  { %s847_s16 = smov [#allocation5]  }
   0xf   :  { %s27_s17 = sshll.u32 %s847_s16, 4  ;;  %s28_s17 = int_to_ptr.vmem [resolvable:$true] %s27_s17 }
  0x10   :  { %s806_s18 = scalar_lea.vmem %s28_s17, 6144  ;;  %p811_p6 = scmp.lt.s32.totalorder %s28_s17, %s28_s17 }
  0x11   :  { %p807_p5 = scmp.ne.s32.totalorder %s28_s17, %s806_s18  ;;  %p812_p7 = scmp.lt.s32.totalorder %s806_s18, %s806_s18 }
  0x13   :  { %p813_p8 = por %p812_p7, %p811_p6 }
  0x15   :  { %p814_p9 = pnand %p813_p8, %p807_p5 }
  0x17   :  { %817 = shalt.err (!%p814_p9)
}
  0x18   :  { %s848_s19 = smov 384   ;;  %s849_s20 = smov 24  }
  0x19   :  { %33 = dma.hbm_to_vmem [thread:$0]  %s889_s1, 6144, %s28_s17, [#allocation6], %s848_s19, %s848_s19, %s849_s20  }
  0x1a   :  { %838 = dma.done.wait [#allocation3], 256  }
  0x1b   :  { %839 = vsyncadd [#allocation3], 4294967040 }
  0x1c   :  { %840 = dma.done.wait [#allocation6], 6144  }
  0x1d   :  { %841 = vsyncadd [#allocation6], 4294961152  ;;  %v850_v0 = vmov 0   ;;  %v704_v1 = vld [vmem:[#allocation5 + $0x154] ss:$24 sps:$4 sm:$0xff]   ;;  %v768_v39 = vld [vmem:[#allocation2 + $0x8] sm:$0xff]  }
  0x1e   :  { %377 = vmatprep.mubr.bf16.mxu0 %v850_v0  ;;  %430 = vmatprep.mubr.bf16.mxu1 %v850_v0  ;;  %v706_v2 = vld [vmem:[#allocation5 + $0x15c] ss:$24 sps:$4 sm:$0xff]   ;;  %v708_v3 = vld [vmem:[#allocation5 + $0x150] ss:$24 sps:$4 sm:$0xff]   ;;  %v712_v6 = vld [vmem:[#allocation5 + $0x12c] ss:$24 sps:$4 sm:$0xff]  }
  0x1f   :  { %345 = vmatprep.subr.bf16.mxu0 %v704_v1  ;;  %v709_v4 = vld [vmem:[#allocation5 + $0x158] ss:$24 sps:$4 sm:$0xff]   ;;  %398 = vmatprep.subr.bf16.mxu1 %v706_v2  ;;  %v710_v5 = vld [vmem:[#allocation5 + $0x124] ss:$24 sps:$4 sm:$0xff]   ;;  %v715_v8 = vld [vmem:[#allocation5 + $0x128] ss:$24 sps:$4 sm:$0xff]  }
  0x20   :  { %346 = vmatpush1.bf16.msra.mxu0 %v708_v3  ;;  %399 = vmatpush1.bf16.msra.mxu1 %v709_v4  ;;  %v714_v7 = vld [vmem:[#allocation5 + $0x120] ss:$24 sps:$4 sm:$0xff]   ;;  %v716_v9 = vld [vmem:[#allocation5 + $0xf4] ss:$24 sps:$4 sm:$0xff]   ;;  %v720_v11 = vld [vmem:[#allocation5 + $0xf0] ss:$24 sps:$4 sm:$0xff]  }
  0x21   :  { %347 = vmatprep.subr.bf16.mxu0 %v710_v5  ;;  %400 = vmatprep.subr.bf16.mxu1 %v712_v6  ;;  %v718_v10 = vld [vmem:[#allocation5 + $0xfc] ss:$24 sps:$4 sm:$0xff]   ;;  %v721_v12 = vld [vmem:[#allocation5 + $0xf8] ss:$24 sps:$4 sm:$0xff]   ;;  %v724_v14 = vld [vmem:[#allocation5 + $0xcc] ss:$24 sps:$4 sm:$0xff]  }
  0x22   :  { %v722_v13 = vld [vmem:[#allocation5 + $0xc4] ss:$24 sps:$4 sm:$0xff]   ;;  %v726_v15 = vld [vmem:[#allocation5 + $0xc0] ss:$24 sps:$4 sm:$0xff]   ;;  %v728_v17 = vld [vmem:[#allocation5 + $0x94] ss:$24 sps:$4 sm:$0xff]  }
  0x23   :  { %v727_v16 = vld [vmem:[#allocation5 + $0xc8] ss:$24 sps:$4 sm:$0xff]   ;;  %v730_v18 = vld [vmem:[#allocation5 + $0x9c] ss:$24 sps:$4 sm:$0xff]   ;;  %v733_v20 = vld [vmem:[#allocation5 + $0x98] ss:$24 sps:$4 sm:$0xff]  }
  0x24   :  { %348 = vmatpush1.bf16.msra.mxu0 %v714_v7  ;;  %401 = vmatpush1.bf16.msra.mxu1 %v715_v8  ;;  %v732_v19 = vld [vmem:[#allocation5 + $0x90] ss:$24 sps:$4 sm:$0xff]   ;;  %v734_v21 = vld [vmem:[#allocation5 + $0x64] ss:$24 sps:$4 sm:$0xff]   ;;  %v738_v23 = vld [vmem:[#allocation5 + $0x60] ss:$24 sps:$4 sm:$0xff]  }
  0x25   :  { %349 = vmatprep.subr.bf16.mxu0 %v716_v9  ;;  %402 = vmatprep.subr.bf16.mxu1 %v718_v10  ;;  %v736_v22 = vld [vmem:[#allocation5 + $0x6c] ss:$24 sps:$4 sm:$0xff]   ;;  %v739_v24 = vld [vmem:[#allocation5 + $0x68] ss:$24 sps:$4 sm:$0xff]   ;;  %v742_v26 = vld [vmem:[#allocation5 + $0x3c] ss:$24 sps:$4 sm:$0xff]  }
  0x26   :  { %v740_v25 = vld [vmem:[#allocation5 + $0x34] ss:$24 sps:$4 sm:$0xff]   ;;  %v744_v27 = vld [vmem:[#allocation5 + $0x30] ss:$24 sps:$4 sm:$0xff]   ;;  %v746_v29 = vld [vmem:[#allocation5 + $0x4] ss:$24 sps:$4 sm:$0xff]  }
  0x27   :  { %v745_v28 = vld [vmem:[#allocation5 + $0x38] ss:$24 sps:$4 sm:$0xff]   ;;  %v748_v30 = vld [vmem:[#allocation5 + $0xc] ss:$24 sps:$4 sm:$0xff]   ;;  %v751_v32 = vld [vmem:[#allocation5 + $0x8] ss:$24 sps:$4 sm:$0xff]  }
  0x28   :  { %350 = vmatpush1.bf16.msra.mxu0 %v720_v11  ;;  %403 = vmatpush1.bf16.msra.mxu1 %v721_v12  ;;  %v750_v31 = vld [vmem:[#allocation5] ss:$24 sps:$4 sm:$0xff]   ;;  %v755_v33 = vld [vmem:[#allocation5 + $0x164] ss:$24 sps:$4 sm:$0xff]   ;;  %v752_v34 = vld [vmem:[#allocation2] sm:$0xff]   ;;  %s851_s0 = smov [#allocation7]  }
  0x29   :  { %351 = vmatprep.subr.bf16.mxu0 %v722_v13  ;;  %404 = vmatprep.subr.bf16.mxu1 %v724_v14  ;;  %v753_v35 = vld [vmem:[#allocation5 + $0x160] ss:$24 sps:$4 sm:$0xff]   ;;  %v758_v36 = vld [vmem:[#allocation5 + $0x134] ss:$24 sps:$4 sm:$0xff]   ;;  %v756_v37 = vld [vmem:[#allocation5 + $0x130] ss:$24 sps:$4 sm:$0xff]  }
  0x2a   :  { %v761_v38 = vld [vmem:[#allocation5 + $0x104] ss:$24 sps:$4 sm:$0xff]   ;;  %v759_v40 = vld [vmem:[#allocation5 + $0x100] ss:$24 sps:$4 sm:$0xff]   ;;  %v764_v41 = vld [vmem:[#allocation5 + $0xd4] ss:$24 sps:$4 sm:$0xff]  }
  0x2b   :  { %v762_v42 = vld [vmem:[#allocation5 + $0xd0] ss:$24 sps:$4 sm:$0xff]   ;;  %v767_v43 = vld [vmem:[#allocation5 + $0xa4] ss:$24 sps:$4 sm:$0xff]   ;;  %v765_v44 = vld [vmem:[#allocation5 + $0xa0] ss:$24 sps:$4 sm:$0xff]  }
  0x2c   :  { %352 = vmatpush1.bf16.msra.mxu0 %v726_v15  ;;  %405 = vmatpush1.bf16.msra.mxu1 %v727_v16  ;;  %v771_v45 = vld [vmem:[#allocation5 + $0x74] ss:$24 sps:$4 sm:$0xff]   ;;  %v769_v46 = vld [vmem:[#allocation5 + $0x70] ss:$24 sps:$4 sm:$0xff]   ;;  %v774_v47 = vld [vmem:[#allocation5 + $0x44] ss:$24 sps:$4 sm:$0xff]  }
  0x2d   :  { %353 = vmatprep.subr.bf16.mxu0 %v728_v17  ;;  %406 = vmatprep.subr.bf16.mxu1 %v730_v18  ;;  %v772_v48 = vld [vmem:[#allocation5 + $0x40] ss:$24 sps:$4 sm:$0xff]   ;;  %v777_v49 = vld [vmem:[#allocation5 + $0x14] ss:$24 sps:$4 sm:$0xff]   ;;  %v775_v50 = vld [vmem:[#allocation5 + $0x10] ss:$24 sps:$4 sm:$0xff]  }
  0x2e   :  { %s593_s1 = sshll.u32 %s851_s0, 4  ;;  %s594_s1 = int_to_ptr.vmem [resolvable:$true] %s593_s1 }
  0x2f   :  { %s818_s23 = scalar_lea.vmem %s594_s1, 1536  ;;  %p823_p11 = scmp.lt.s32.totalorder %s594_s1, %s594_s1 }
  0x30   :  { %354 = vmatpush1.bf16.msra.mxu0 %v732_v19  ;;  %407 = vmatpush1.bf16.msra.mxu1 %v733_v20  ;;  %p819_p10 = scmp.ne.s32.totalorder %s594_s1, %s818_s23  ;;  %p824_p12 = scmp.lt.s32.totalorder %s818_s23, %s818_s23 }
  0x31   :  { %355 = vmatprep.subr.bf16.mxu0 %v734_v21  ;;  %408 = vmatprep.subr.bf16.mxu1 %v736_v22 }
  0x32   :  { %p825_p13 = por %p824_p12, %p823_p11 }
  0x34   :  { %356 = vmatpush1.bf16.msra.mxu0 %v738_v23  ;;  %409 = vmatpush1.bf16.msra.mxu1 %v739_v24  ;;  %p826_p0 = pnand %p825_p13, %p819_p10 }
  0x35   :  { %357 = vmatprep.subr.bf16.mxu0 %v740_v25  ;;  %410 = vmatprep.subr.bf16.mxu1 %v742_v26 }
  0x38   :  { %358 = vmatpush1.bf16.msra.mxu0 %v744_v27  ;;  %411 = vmatpush1.bf16.msra.mxu1 %v745_v28 }
  0x39   :  { %359 = vmatprep.subr.bf16.mxu0 %v746_v29  ;;  %412 = vmatprep.subr.bf16.mxu1 %v748_v30 }
  0x3c   :  { %360 = vmatpush1.bf16.msra.mxu0 %v750_v31  ;;  %413 = vmatpush1.bf16.msra.mxu1 %v751_v32 }
  0x3d   :  { %451 = vmatprep.subr.bf16.mxu0 %v755_v33  ;;  %680 = vmatprep.subr.bf16.mxu1 %v755_v33 }
  0x3f   :  { %378 = vmatmul.mubr.bf16.vlgmr.msra.gmra.mxu0 %v752_v34  ;;  %431 = vmatmul.mubr.bf16.vlgmr.msra.gmra.mxu1 %v752_v34 }
  0x40   :  { %452 = vmatpush1.bf16.msra.mxu0 %v753_v35  ;;  %688 = vmatpush1.bf16.msra.mxu1 %v753_v35 }
  0x41   :  { %453 = vmatprep.subr.bf16.mxu0 %v758_v36  ;;  %681 = vmatprep.subr.bf16.mxu1 %v758_v36 }
  0x42   :  { %387 = vmatprep.mubr.bf16.mxu0 %v850_v0  ;;  %440 = vmatprep.mubr.bf16.mxu1 %v850_v0 }
  0x44   :  { %454 = vmatpush1.bf16.msra.mxu0 %v756_v37  ;;  %689 = vmatpush1.bf16.msra.mxu1 %v756_v37 }
  0x45   :  { %455 = vmatprep.subr.bf16.mxu0 %v761_v38  ;;  %682 = vmatprep.subr.bf16.mxu1 %v761_v38 }
  0x47   :  { %388 = vmatmul.mubr.bf16.gmra.mxu0 %v768_v39  ;;  %441 = vmatmul.mubr.bf16.gmra.mxu1 %v768_v39 }
  0x48   :  { %456 = vmatpush1.bf16.msra.mxu0 %v759_v40  ;;  %690 = vmatpush1.bf16.msra.mxu1 %v759_v40 }
  0x49   :  { %457 = vmatprep.subr.bf16.mxu0 %v764_v41  ;;  %683 = vmatprep.subr.bf16.mxu1 %v764_v41 }
  0x4a   :  { %483 = vmatprep.mubr.bf16.mxu0 %v850_v0  ;;  %493 = vmatprep.mubr.bf16.mxu1 %v850_v0 }
  0x4c   :  { %458 = vmatpush1.bf16.msra.mxu0 %v762_v42  ;;  %691 = vmatpush1.bf16.msra.mxu1 %v762_v42 }
  0x4d   :  { %459 = vmatprep.subr.bf16.mxu0 %v767_v43  ;;  %684 = vmatprep.subr.bf16.mxu1 %v767_v43 }
  0x50   :  { %460 = vmatpush1.bf16.msra.mxu0 %v765_v44  ;;  %692 = vmatpush1.bf16.msra.mxu1 %v765_v44 }
  0x51   :  { %461 = vmatprep.subr.bf16.mxu0 %v771_v45  ;;  %685 = vmatprep.subr.bf16.mxu1 %v771_v45 }
  0x54   :  { %462 = vmatpush1.bf16.msra.mxu0 %v769_v46  ;;  %693 = vmatpush1.bf16.msra.mxu1 %v769_v46 }
  0x55   :  { %463 = vmatprep.subr.bf16.mxu0 %v774_v47  ;;  %686 = vmatprep.subr.bf16.mxu1 %v774_v47 }
  0x58   :  { %464 = vmatpush1.bf16.msra.mxu0 %v772_v48  ;;  %694 = vmatpush1.bf16.msra.mxu1 %v772_v48 }
  0x59   :  { %465 = vmatprep.subr.bf16.mxu0 %v777_v49  ;;  %687 = vmatprep.subr.bf16.mxu1 %v777_v49 }
  0x5c   :  { %466 = vmatpush1.bf16.msra.mxu0 %v775_v50  ;;  %695 = vmatpush1.bf16.msra.mxu1 %v775_v50 }
  0x5f   :  { %484 = vmatmul.mubr.bf16.vlgmr.msra.gmra.mxu0 %v752_v34  ;;  %494 = vmatmul.mubr.bf16.vlgmr.msra.gmra.mxu1 %v768_v39 }
  0xff   :  { %v379_v51 = vpop.f32.mrf.mxu0  ;;  %v432_v52 = vpop.f32.mrf.mxu1 }
 0x101   :  { %v381_v53 = vpop.f32.mrf.mxu0  ;;  %v434_v54 = vpop.f32.mrf.mxu1 }
 0x102   :  { %v668_v55 = vpack.c.bf16 %v381_v53, %v379_v51  ;;  %v669_v56 = vpack.c.bf16 %v434_v54, %v432_v52 }
 0x103   :  { %v383_v57 = vpop.f32.mrf.mxu0  ;;  %v436_v58 = vpop.f32.mrf.mxu1 }
 0x104   :  { %576 = vst [vmem:[#allocation7] sm:$0xff] %v668_v55  ;;  %577 = vst [vmem:[#allocation7 + $0x8] sm:$0xff] %v669_v56 }
 0x105   :  { %v385_v59 = vpop.f32.mrf.mxu0  ;;  %v438_v60 = vpop.f32.mrf.mxu1 }
 0x106   :  { %v671_v61 = vpack.c.bf16 %v385_v59, %v383_v57  ;;  %v672_v62 = vpack.c.bf16 %v438_v60, %v436_v58 }
 0x107   :  { %v389_v63 = vpop.f32.mrf.mxu0  ;;  %v442_v0 = vpop.f32.mrf.mxu1 }
 0x108   :  { %579 = vst [vmem:[#allocation7 + $0x18] sm:$0xff] %v671_v61  ;;  %580 = vst [vmem:[#allocation7 + $0x20] sm:$0xff] %v672_v62 }
 0x109   :  { %v391_v1 = vpop.f32.mrf.mxu0  ;;  %v444_v2 = vpop.f32.mrf.mxu1 }
 0x10a   :  { %v674_v3 = vpack.c.bf16 %v391_v1, %v389_v63  ;;  %v675_v4 = vpack.c.bf16 %v444_v2, %v442_v0 }
 0x10b   :  { %v393_v5 = vpop.f32.mrf.mxu0  ;;  %v446_v6 = vpop.f32.mrf.mxu1 }
 0x10c   :  { %582 = vst [vmem:[#allocation7 + $0x30] sm:$0xff] %v674_v3  ;;  %583 = vst [vmem:[#allocation7 + $0x38] sm:$0xff] %v675_v4 }
 0x10d   :  { %v395_v7 = vpop.f32.mrf.mxu0  ;;  %v448_v8 = vpop.f32.mrf.mxu1 }
 0x10e   :  { %v677_v9 = vpack.c.bf16 %v395_v7, %v393_v5  ;;  %v678_v10 = vpack.c.bf16 %v448_v8, %v446_v6 }
 0x110   :  { %585 = vst [vmem:[#allocation7 + $0x48] sm:$0xff] %v677_v9  ;;  %586 = vst [vmem:[#allocation7 + $0x50] sm:$0xff] %v678_v10 }
 0x11f   :  { %v485_v11 = vpop.f32.mrf.mxu0  ;;  %v495_v12 = vpop.f32.mrf.mxu1 }
 0x121   :  { %v487_v13 = vpop.f32.mrf.mxu0  ;;  %v497_v14 = vpop.f32.mrf.mxu1 }
 0x122   :  { %v670_v15 = vpack.c.bf16 %v487_v13, %v485_v11  ;;  %v676_v16 = vpack.c.bf16 %v497_v14, %v495_v12 }
 0x123   :  { %v489_v17 = vpop.f32.mrf.mxu0  ;;  %v499_v18 = vpop.f32.mrf.mxu1 }
 0x124   :  { %578 = vst [vmem:[#allocation7 + $0x10] sm:$0xff] %v670_v15  ;;  %584 = vst [vmem:[#allocation7 + $0x40] sm:$0xff] %v676_v16 }
 0x125   :  { %v491_v19 = vpop.f32.mrf.mxu0  ;;  %v501_v20 = vpop.f32.mrf.mxu1 }
 0x126   :  { %v673_v21 = vpack.c.bf16 %v491_v19, %v489_v17  ;;  %v679_v22 = vpack.c.bf16 %v501_v20, %v499_v18 }
 0x128   :  { %581 = vst [vmem:[#allocation7 + $0x28] sm:$0xff] %v673_v21  ;;  %587 = vst [vmem:[#allocation7 + $0x58] sm:$0xff] %v679_v22 }
 0x129   :  { %829 = shalt.err (!%p826_p0)
}
 0x12a   :  { %599 = dma.vmem_to_hbm [thread:$0]  %s594_s1, 1536, %s890_s2, [#allocation4], %s848_s19, %s848_s19, %s849_s20  }
 0x12b   :  { %842 = dma.done.wait [#allocation4], 1536  }
 0x12c   :  { %843 = vsyncadd [#allocation4], 4294965760 }
 0x12d   :  { %603 = vsyncpa [#allocation3], 1 }
 0x12e   :  { %604 = vsyncpa [#allocation6], 1 }
 0x12f   :  { %605 = vsyncpa [#allocation4], 1 }

</bundles_post_ra>
